<compile_context>
chip_gen: v7x
topology: tpu7x:2x2x1
jax: 0.10.0
libtpu: 0.0.40
codegen_flags: <defaults>
</compile_context>

<pallas_src>
import math

import jax
import jax.numpy as jnp
from jax import lax
from jax.experimental import pallas as pl
from jax.experimental.pallas import tpu as pltpu


def mlp_kernel(x_ref, w_ref, out_ref):
    """x_ref: (row_blk, Dp), w_ref: packed (R, 128) slab, out_ref: (1, row_blk)."""
    Dp = x_ref.shape[1]          # padded input feature dim (multiple of 8)
    H = w_ref.shape[1]           # 128 — lane-dense padded hidden width

    # Static, 8-aligned row slices into the packed weight slab
    # (layout must match pack_weight_slab below).  Do not reorder/reshape.
    r = 0
    w1 = w_ref[r:r + Dp, :]      # (Dp, H)  fc1 weight (zero-padded columns)
    r += Dp
    b1 = w_ref[r:r + 1, :]       # (1, H)   fc1 bias   (row 0 of 8-row pad block)
    r += 8
    w2 = w_ref[r:r + H, :]       # (H, H)   fc2 weight
    r += H
    b2 = w_ref[r:r + 1, :]       # (1, H)   fc2 bias
    r += 8
    w3t = w_ref[r:r + 1, :]      # (1, H)   fc3 weight transposed (out_dim == 1)
    r += 8
    b3 = w_ref[r:r + 1, 0:1]     # (1, 1)   fc3 bias scalar

    x = x_ref[...]
    h1 = jnp.maximum(
        jnp.dot(x, w1, preferred_element_type=jnp.float32) + b1, 0.0)
    # TODO(synk): nn.Dropout(p=0.01) omitted (eval-mode identity); training mode
    # would need pltpu.prng_seed / pltpu.prng_random_bits masking here.
    h2 = jnp.maximum(
        jnp.dot(h1, w2, preferred_element_type=jnp.float32) + b2, 0.0)
    # fc3: contract the hidden dim of w3^T (1,H) against dim 1 of h2 (row_blk,H)
    # -> lane-dense (1, row_blk) tile; bias is a scalar broadcast.
    out = lax.dot_general(w3t, h2, (((1,), (1,)), ((), ())),
                          preferred_element_type=jnp.float32)
    out_ref[...] = out + b3


def _round_up(a, m):
    return ((a + m - 1) // m) * m


def pack_weight_slab(params, d_pad, h_pad):
    """Pack (w1,b1,w2,b2,w3,b3) into one lane-dense (R, h_pad) f32 slab.

    Zero padding of hidden dims to h_pad lanes is exact through the ReLUs, so
    the kernel math is unchanged.  All row offsets are 8-aligned.  Weights are
    stored (in_dim, out_dim); fc3 is packed transposed as a single row.
    """
    w1, b1, w2, b2, w3, b3 = params
    assert w3.shape[1] == 1, "packing assumes output_dim == 1"

    def pad2(a, rows, cols):
        a = jnp.asarray(a, jnp.float32)
        return jnp.pad(a, ((0, rows - a.shape[0]), (0, cols - a.shape[1])))

    parts = [
        pad2(w1, d_pad, h_pad),              # fc1 weight : rows [0, d_pad)
        pad2(b1.reshape(1, -1), 8, h_pad),   # fc1 bias   : row  d_pad
        pad2(w2, h_pad, h_pad),              # fc2 weight
        pad2(b2.reshape(1, -1), 8, h_pad),   # fc2 bias
        pad2(w3.T, 8, h_pad),                # fc3 weight^T : row 0 holds E reals
        pad2(b3.reshape(1, -1), 8, h_pad),   # fc3 bias   : scalar at [0, 0]
    ]
    return jnp.concatenate(parts, axis=0)


def mlp_forward(x, params):
    """Pallas MLP forward. x: (..., D) -> (...,), matching torch MLP (eval mode)."""
    w1, b1, w2, b2, w3, b3 = params
    D, F = w1.shape
    E = w2.shape[1]
    H = 128                                   # lane-dense padded hidden width
    assert max(F, E, w3.shape[1]) <= H, "hidden/output dims must fit 128 lanes"

    lead = x.shape[:-1]
    rows = math.prod(lead) if lead else 1
    x2 = jnp.asarray(x, jnp.float32).reshape(rows, D)   # flatten in wrapper

    d_pad = _round_up(D, 8)
    rows8 = _round_up(rows, 8)

    # Row block: multiple of 128 when possible (unmasked lane-dense stores),
    # >= 2 grid steps when rows permit (v7x megacore), capped at 4096 so a
    # double-buffered step stays well under the 32 MiB scoped VMEM default
    # (and v7x's 64 MiB physical).
    if rows8 <= 128:
        row_blk = rows8
    elif rows8 <= 256:
        row_blk = 128
    else:
        row_blk = min(4096, _round_up(pl.cdiv(rows8, 2), 128))
    num_blocks = pl.cdiv(rows, row_blk)

    # Pad only when required (common aligned case: no extra HBM copy of x).
    pad_r = row_blk - rows if rows < row_blk else 0
    pad_c = d_pad - D
    if pad_r or pad_c:
        x2 = jnp.pad(x2, ((0, pad_r), (0, pad_c)))

    slab = pack_weight_slab(params, d_pad, H)
    R = slab.shape[0]

    flops = 2 * num_blocks * row_blk * (d_pad * H + H * H + H)
    bytes_accessed = 4 * (x2.size + slab.size + num_blocks * row_blk)

    out = pl.pallas_call(
        mlp_kernel,
        out_shape=jax.ShapeDtypeStruct((num_blocks, row_blk), jnp.float32),
        grid=(num_blocks,),
        in_specs=[
            pl.BlockSpec((row_blk, d_pad), lambda i: (i, 0)),
            pl.BlockSpec((R, H), lambda i: (0, 0)),   # slab resident across steps
        ],
        out_specs=pl.BlockSpec((1, row_blk), lambda i: (i, 0)),
        compiler_params=pltpu.CompilerParams(
            dimension_semantics=("parallel",)),        # row blocks independent
        cost_estimate=pl.CostEstimate(
            flops=flops, transcendentals=0, bytes_accessed=bytes_accessed),
    )(x2, slab)

    # Output is already lane-dense per block; just flatten and drop pad rows.
    return out.reshape(-1)[:rows].reshape(lead)


def mlp_ref(x, params):
    """Pure-JAX reference matching the PyTorch MLP.forward semantics (eval)."""
    w1, b1, w2, b2, w3, b3 = params
    h1 = jnp.maximum(x @ w1 + b1, 0.0)
    h2 = jnp.maximum(h1 @ w2 + b2, 0.0)
    return (h2 @ w3 + b3)[..., 0]             # output_dim == 1 -> squeeze(-1)


def init_params(key, D, F=64, E=64, O=1):
    """Deterministic synthetic parameters (same shapes as the torch module).

    Weights are stored (in_dim, out_dim); the kernel computes x @ W + b.
    (Real torch nn.Linear weights are (out, in) and must be transposed first.)"""
    ks = jax.random.split(key, 6)

    def u(k, shape, fan):
        bound = 1.0 / math.sqrt(fan)
        return jax.random.uniform(k, shape, jnp.float32, -bound, bound)

    w1 = u(ks[0], (D, F), D); b1 = u(ks[1], (F,), F)
    w2 = u(ks[2], (F, E), F); b2 = u(ks[3], (E,), E)
    w3 = u(ks[4], (E, O), E); b3 = u(ks[5], (O,), O)
    return (w1, b1, w2, b2, w3, b3)


if __name__ == "__main__":
    B, N, D = 2, 8, 32            # batch, seq, input_dim (small test shapes)
    key = jax.random.PRNGKey(0)
    kx, kp = jax.random.split(key)
    x = jax.random.normal(kx, (B, N, D), dtype=jnp.float32)
    params = init_params(kp, D)   # feed_forward_dim=64, embedding_dim=64, out=1

    out = jax.block_until_ready(mlp_forward(x, params))
    ref = jax.block_until_ready(mlp_ref(x, params))

    assert out.shape == (B, N), out.shape
    if not jnp.allclose(out, ref, rtol=1e-5, atol=1e-5):
        raise AssertionError(f"mismatch:\n{out}\nvs\n{ref}")
    print("KERNEL_OK")
</pallas_src>

<mosaic_0001>
module attributes {stable_mosaic.version = 11 : i64} {
  func.func @mlp_kernel(%arg0: i32, %arg1: memref<16x32xf32, #tpu.memory_space<vmem>>, %arg2: memref<192x128xf32, #tpu.memory_space<vmem>>, %arg3: memref<1x16xf32, #tpu.memory_space<vmem>>) attributes {dimension_semantics = [#tpu.dimension_semantics<parallel>], iteration_bounds = array<i64: 1>, scalar_prefetch = 0 : i64, scratch_operands = 0 : i64, tpu.core_type = #tpu.core_type<tc>, window_params = [{transform_indices = @transform_0, window_bounds = array<i64: 16, 32>}, {pipeline_mode = #tpu.pipeline_mode<synchronous>, transform_indices = @transform_1, window_bounds = array<i64: 192, 128>}, {transform_indices = @transform_2, window_bounds = array<i64: 1, 16>}]} {
    %c0 = arith.constant 0 : index
    %c0_0 = arith.constant 0 : index
    %0 = vector.load %arg2[%c0, %c0_0] : memref<192x128xf32, #tpu.memory_space<vmem>>, vector<32x128xf32>
    %c32 = arith.constant 32 : index
    %c0_1 = arith.constant 0 : index
    %1 = vector.load %arg2[%c32, %c0_1] : memref<192x128xf32, #tpu.memory_space<vmem>>, vector<1x128xf32>
    %c40 = arith.constant 40 : index
    %c0_2 = arith.constant 0 : index
    %2 = vector.load %arg2[%c40, %c0_2] : memref<192x128xf32, #tpu.memory_space<vmem>>, vector<128x128xf32>
    %c168 = arith.constant 168 : index
    %c0_3 = arith.constant 0 : index
    %3 = vector.load %arg2[%c168, %c0_3] : memref<192x128xf32, #tpu.memory_space<vmem>>, vector<1x128xf32>
    %c176 = arith.constant 176 : index
    %c0_4 = arith.constant 0 : index
    %4 = vector.load %arg2[%c176, %c0_4] : memref<192x128xf32, #tpu.memory_space<vmem>>, vector<1x128xf32>
    %c184 = arith.constant 184 : index
    %c0_5 = arith.constant 0 : index
    %5 = vector.load %arg2[%c184, %c0_5] : memref<192x128xf32, #tpu.memory_space<vmem>>, vector<1x1xf32>
    %c0_6 = arith.constant 0 : index
    %c0_7 = arith.constant 0 : index
    %6 = vector.load %arg1[%c0_6, %c0_7] : memref<16x32xf32, #tpu.memory_space<vmem>>, vector<16x32xf32>
    %cst = arith.constant dense<0.000000e+00> : vector<16x128xf32>
    %7 = tpu.matmul %6, %0, %cst {dimension_numbers = #tpu.dot_dimension_numbers<[1], [0], [0], [1], [0, 0, 1, 1], [], []>} : vector<16x32xf32>, vector<32x128xf32>, vector<16x128xf32> -> vector<16x128xf32>
    %8 = vector.broadcast %1 : vector<1x128xf32> to vector<16x128xf32>
    %9 = arith.addf %7, %8 : vector<16x128xf32>
    %cst_8 = arith.constant 0.000000e+00 : f32
    %10 = vector.broadcast %cst_8 : f32 to vector<16x128xf32>
    %11 = arith.maximumf %9, %10 : vector<16x128xf32>
    %cst_9 = arith.constant dense<0.000000e+00> : vector<16x128xf32>
    %12 = tpu.matmul %11, %2, %cst_9 {dimension_numbers = #tpu.dot_dimension_numbers<[1], [0], [0], [1], [0, 0, 1, 1], [], []>} : vector<16x128xf32>, vector<128x128xf32>, vector<16x128xf32> -> vector<16x128xf32>
    %13 = vector.broadcast %3 : vector<1x128xf32> to vector<16x128xf32>
    %14 = arith.addf %12, %13 : vector<16x128xf32>
    %cst_10 = arith.constant 0.000000e+00 : f32
    %15 = vector.broadcast %cst_10 : f32 to vector<16x128xf32>
    %16 = arith.maximumf %14, %15 : vector<16x128xf32>
    %cst_11 = arith.constant dense<0.000000e+00> : vector<1x16xf32>
    %17 = tpu.matmul %4, %16, %cst_11 {dimension_numbers = #tpu.dot_dimension_numbers<[1], [1], [0], [0], [0, 0, 1, 0], [], []>} : vector<1x128xf32>, vector<16x128xf32>, vector<1x16xf32> -> vector<1x16xf32>
    %18 = vector.broadcast %5 : vector<1x1xf32> to vector<1x16xf32>
    %19 = arith.addf %17, %18 : vector<1x16xf32>
    %c0_12 = arith.constant 0 : index
    %c0_13 = arith.constant 0 : index
    %20 = vector.load %arg3[%c0_12, %c0_13] : memref<1x16xf32, #tpu.memory_space<vmem>>, vector<1x16xf32>
    tpu.vector_store %arg3[%c0_12, %c0_13], %19 {strides = array<i32>} : memref<1x16xf32, #tpu.memory_space<vmem>>, vector<1x16xf32>,
    return
  }
  func.func @transform_0(%arg0: i32) -> (i32, i32) {
    %c0_i32 = arith.constant 0 : i32
    %c0_i32_0 = arith.constant 0 : i32
    return %arg0, %c0_i32 : i32, i32
  }
  func.func @transform_1(%arg0: i32) -> (i32, i32) {
    %c0_i32 = arith.constant 0 : i32
    %c0_i32_0 = arith.constant 0 : i32
    %c0_i32_1 = arith.constant 0 : i32
    return %c0_i32, %c0_i32_0 : i32, i32
  }
  func.func @transform_2(%arg0: i32) -> (i32, i32) {
    %c0_i32 = arith.constant 0 : i32
    %c0_i32_0 = arith.constant 0 : i32
    return %arg0, %c0_i32 : i32, i32
  }
}

</mosaic_0001>

<bundles_post_ra>
// kernel: tpu_custom_call.1
= control target key start
LH: loop header
LB: loop body
LE: loop exit
PB: predicated region body
PF: predicated region fallthrough
CT: control target
= control target key end

     0   :  { %7 = vsyncpa [#allocation3], 0  ;;  %s599_s0 = inlined_call_operand.hbm [shape: f32[16,32], index: 0, kind: input, shape index: {}]   ;;  %s600_s1 = inlined_call_operand.hbm [shape: f32[192,128], index: 1, kind: input, shape index: {}]   ;;  %s601_s2 = inlined_call_operand.hbm [shape: f32[1,16], index: 2, kind: output, shape index: {}]  }
   0x1   :  { %8 = vsyncpa [#allocation6], 0 }
   0x2   :  { %9 = vsyncpa [#allocation4], 0  ;;  %s537_s9 = smov [#allocation2]   ;;  %s465_s13 = scalar_lea.hbm %s599_s0, 256 }
   0x3   :  { %s15_s10 = sshll.u32 %s537_s9, 4  ;;  %p466_p0 = scmp.ne.s32.totalorder %s599_s0, %s465_s13  ;;  %s16_s10 = int_to_ptr.vmem [resolvable:$true] %s15_s10 }
   0x4   :  { %p469_p1 = scmp.lt.u32.totalorder %s465_s13, %s599_s0 }
   0x6   :  { %p471_p2 = pnand %p469_p1, %p466_p0 }
   0x8   :  { %474 = shalt.err (!%p471_p2)
}
   0x9   :  { %s475_s18 = scalar_lea.vmem %s16_s10, 256  ;;  %p480_p4 = scmp.lt.s32.totalorder %s16_s10, %s16_s10 }
   0xa   :  { %p476_p3 = scmp.ne.s32.totalorder %s16_s10, %s475_s18  ;;  %p481_p5 = scmp.lt.s32.totalorder %s475_s18, %s475_s18 }
   0xc   :  { %p482_p6 = por %p481_p5, %p480_p4 }
   0xe   :  { %p483_p7 = pnand %p482_p6, %p476_p3 }
  0x10   :  { %486 = shalt.err (!%p483_p7)
}
  0x11   :  { %s538_s19 = smov 128   ;;  %s539_s20 = smov 8  }
  0x12   :  { %21 = dma.hbm_to_vmem [thread:$0]  %s599_s0, 256, %s16_s10, [#allocation3], %s538_s19, %s538_s19, %s539_s20  }
  0x13   :  { %s540_s23 = smov [#allocation5]   ;;  %s487_s27 = scalar_lea.hbm %s600_s1, 3072 }
  0x14   :  { %s27_s24 = sshll.u32 %s540_s23, 4  ;;  %p488_p8 = scmp.ne.s32.totalorder %s600_s1, %s487_s27  ;;  %s28_s24 = int_to_ptr.vmem [resolvable:$true] %s27_s24 }
  0x15   :  { %p491_p9 = scmp.lt.u32.totalorder %s487_s27, %s600_s1 }
  0x17   :  { %p493_p10 = pnand %p491_p9, %p488_p8 }
  0x19   :  { %496 = shalt.err (!%p493_p10)
}
  0x1a   :  { %s497_s4 = scalar_lea.vmem %s28_s24, 3072  ;;  %p502_p12 = scmp.lt.s32.totalorder %s28_s24, %s28_s24 }
  0x1b   :  { %p498_p11 = scmp.ne.s32.totalorder %s28_s24, %s497_s4  ;;  %p503_p13 = scmp.lt.s32.totalorder %s497_s4, %s497_s4 }
  0x1d   :  { %p504_p0 = por %p503_p13, %p502_p12 }
  0x1f   :  { %p505_p1 = pnand %p504_p0, %p498_p11 }
  0x21   :  { %508 = shalt.err (!%p505_p1)
}
  0x22   :  { %33 = dma.hbm_to_vmem [thread:$0]  %s600_s1, 3072, %s28_s24, [#allocation6], %s538_s19, %s538_s19, %s539_s20  }
  0x23   :  { %531 = dma.done.wait [#allocation3], 256  }
  0x24   :  { %532 = vsyncadd [#allocation3], 4294967040 }
  0x25   :  { %533 = dma.done.wait [#allocation6], 3072  }
  0x26   :  { %534 = vsyncadd [#allocation6], 4294964224  ;;  %vm70_vm0 = vcmask 261120   ;;  %v40_v0 = vld [vmem:[#allocation5] sm:$0xff]  ;;  %v41_v1 = vld [vmem:[#allocation5 + $0x8] sm:$0xff]  ;;  %v541_v39 = vmov 0.0|0.0  }
  0x27   :  { %v42_v2 = vld [vmem:[#allocation5 + $0x10] sm:$0xff]  ;;  %v412_v3 = vpack.c.bf16 %v41_v1, %v40_v0  ;;  %v43_v4 = vld [vmem:[#allocation5 + $0x18] sm:$0xff]  ;;  %v45_v7 = vld [vmem:[#allocation5 + $0x28] sm:$0xff]  ;;  %vm542_vm1 = vmmov 0   ;;  %v543_v40 = vmov 0.0   ;;  %v544_v42 = vmov 0  }
  0x28   :  { %v64_v5 = vld [vmem:[#allocation2] sm:$0xff]  ;;  %v416_v6 = vpack.c.bf16 %v43_v4, %v42_v2  ;;  %v47_v9 = vld [vmem:[#allocation5 + $0x38] sm:$0xff]  ;;  %v48_v11 = vld [vmem:[#allocation5 + $0x40] sm:$0xff]  ;;  %464 = vset.pattern.permute.xlu0 %v544_v42  ;;  %s545_s1 = smov [#allocation7]   ;;  %vm310_vm2 = vcmask 122880  }
  0x29   :  { %367 = vmatprep.mubr.msk.f32.mxu0 %vm70_vm0, %v64_v5  ;;  %v46_v8 = vld [vmem:[#allocation5 + $0x30] sm:$0xff]  ;;  %413 = vmatprep.subr.bf16.mxu0 %v412_v3  ;;  %v424_v12 = vpack.c.bf16 %v48_v11, %v47_v9  ;;  %v49_v13 = vld [vmem:[#allocation5 + $0x48] sm:$0xff]  ;;  %v65_v16 = vld [vmem:[#allocation2 + $0x8] sm:$0xff]  ;;  %s318_s6 = sshll.u32 %s545_s1, 4  ;;  %s319_s6 = int_to_ptr.vmem [resolvable:$true] %s318_s6 }
  0x2a   :  { %v420_v10 = vpack.c.bf16 %v46_v8, %v45_v7  ;;  %415 = vmatpush3.bf16.msra.mxu0 %v412_v3  ;;  %v50_v14 = vld [vmem:[#allocation5 + $0x50] sm:$0xff]  ;;  %v51_v17 = vld [vmem:[#allocation5 + $0x58] sm:$0xff]  ;;  %v52_v18 = vld [vmem:[#allocation5 + $0x60] sm:$0xff]  ;;  %s509_s7 = scalar_lea.vmem %s319_s6, 16  ;;  %s513_s8 = scalar_lea.vmem %s319_s6, 32 }
  0x2b   :  { %417 = vmatprep.subr.bf16.mxu0 %v416_v6  ;;  %v428_v15 = vpack.c.bf16 %v50_v14, %v49_v13  ;;  %v432_v19 = vpack.c.bf16 %v52_v18, %v51_v17  ;;  %v53_v20 = vld [vmem:[#allocation5 + $0x68] sm:$0xff]  ;;  %v54_v21 = vld [vmem:[#allocation5 + $0x70] sm:$0xff]  ;;  %v55_v23 = vld [vmem:[#allocation5 + $0x78] sm:$0xff]  ;;  %p510_p2 = scmp.ne.s32.totalorder %s319_s6, %s509_s7  ;;  %p514_p3 = scmp.lt.s32.totalorder %s319_s6, %s319_s6 }
  0x2c   :  { %421 = vmatprep.subr.bf16.mxu1 %v420_v10  ;;  %v436_v22 = vpack.c.bf16 %v54_v21, %v53_v20  ;;  %v56_v24 = vld [vmem:[#allocation5 + $0x80] sm:$0xff]  ;;  %v57_v26 = vld [vmem:[#allocation5 + $0x88] sm:$0xff]  ;;  %v58_v27 = vld [vmem:[#allocation5 + $0x90] sm:$0xff]  ;;  %p515_p4 = scmp.lt.s32.totalorder %s513_s8, %s509_s7 }
  0x2d   :  { %423 = vmatpush3.bf16.msra.mxu1 %v420_v10  ;;  %v440_v25 = vpack.c.bf16 %v56_v24, %v55_v23  ;;  %v444_v28 = vpack.c.bf16 %v58_v27, %v57_v26  ;;  %v59_v29 = vld [vmem:[#allocation5 + $0x98] sm:$0xff]  ;;  %v60_v30 = vld [vmem:[#allocation5 + $0xa0] sm:$0xff]  ;;  %v331_v43 = vld [vmem:[#allocation5 + $0xa8] ss:$0 sm:$0xff] }
  0x2e   :  { %425 = vmatprep.subr.bf16.mxu1 %v424_v12  ;;  %419 = vmatpush3.bf16.msra.mxu0 %v416_v6  ;;  %v448_v31 = vpack.c.bf16 %v60_v30, %v59_v29  ;;  %v328_v32 = vld [vmem:[#allocation5 + $0x20] ss:$0 sm:$0xff]  ;;  %v63_v41 = vld [vmem:[#allocation5 + $0xb8] sm:$0x1]  ;;  %v62_v51 = vld [vmem:[#allocation5 + $0xb0] sm:$0x1]  ;;  %p516_p5 = por %p515_p4, %p514_p3 }
  0x2f   :  { %452 = vmatprep.subr.bf16.mxu0 %v541_v39  ;;  %237 = vperm.xlu0 %464, %v63_v41  }
  0x30   :  { %p517_p6 = pnand %p516_p5, %p510_p2 }
  0x31   :  { %427 = vmatpush3.bf16.msra.mxu1 %v424_v12  ;;  %368 = vmatmul.mubr.msk.f32.vlgmr.msra.gmra.mrb[0].mxu0 %vm70_vm0, %v65_v16 }
  0x32   :  { %429 = vmatprep.subr.bf16.mxu1 %v428_v15  ;;  %409 = vmatprep.mubr.msk.f32.mxu0 %vm542_vm1, %v543_v40 }
  0x35   :  { %431 = vmatpush3.bf16.msra.mxu1 %v428_v15 }
  0x36   :  { %433 = vmatprep.subr.bf16.mxu1 %v432_v19 }
  0x39   :  { %435 = vmatpush3.bf16.msra.mxu1 %v432_v19 }
  0x3a   :  { %437 = vmatprep.subr.bf16.mxu1 %v436_v22 }
  0x3d   :  { %439 = vmatpush3.bf16.msra.mxu1 %v436_v22 }
  0x3e   :  { %441 = vmatprep.subr.bf16.mxu1 %v440_v25 }
  0x41   :  { %443 = vmatpush3.bf16.msra.mxu1 %v440_v25 }
  0x42   :  { %445 = vmatprep.subr.bf16.mxu1 %v444_v28 }
  0x45   :  { %447 = vmatpush3.bf16.msra.mxu1 %v444_v28 }
  0x46   :  { %449 = vmatprep.subr.bf16.mxu1 %v448_v31 }
  0x49   :  { %451 = vmatpush3.bf16.msra.mxu1 %v448_v31 }
  0xae   :  { %v238_v52 = vpop.permute.xlu0 %237 }
 0x104   :  { %v369_v33 = vpop.f32.mrb[0].mxu0 }
 0x105   :  { %v149_v34 = vadd.f32 %v369_v33, %v328_v32  ;;  %v143_v35 = vpop.f32.mrb[1].mxu0 }
 0x106   :  { %v144_v36 = vadd.f32 %v328_v32, %v143_v35 }
 0x107   :  { %v153_v38 = vmax.f32 %v149_v34, 0.0 }
 0x108   :  { %v152_v37 = vmax.f32 %v144_v36, 0.0 }
 0x10a   :  { %402 = vmatprep.mubr.f32.mxu1 %v152_v37 }
 0x10b   :  { %403 = vmatmul.mubr.f32.vlgmr.msra.gmra.mrb[0].mxu1 %v153_v38 }
 0x1de   :  { %v404_v44 = vpop.f32.mrb[0].mxu1 }
 0x1df   :  { %v230_v45 = vadd.f32 %v404_v44, %v331_v43  ;;  %v224_v46 = vpop.f32.mrb[1].mxu1 }
 0x1e0   :  { %v225_v47 = vadd.f32 %v331_v43, %v224_v46 }
 0x1e1   :  { %v234_v48 = vmax.f32 %v230_v45, 0.0 }
 0x1e2   :  { %v233_v49 = vmax.f32 %v225_v47, 0.0 }
 0x1e4   :  { %v453_v50 = vpack.c.bf16 %v234_v48, %v233_v49 }
 0x1e6   :  { %454 = vmatpush3.bf16.xpose.msra.mxu0 %v453_v50 }
 0x1ed   :  { %410 = vmatmul.mubr.f32.vlgmr.msra.gmra.mrb[2].mxu0 %v62_v51 }
 0x2c0   :  { %v306_v53 = vpop.f32.mrb[2].mxu0 }
 0x2c1   :  { %v307_v54 = vadd.f32 %v306_v53, %v238_v52  ;;  %v411_v55 = vpop.f32.mrb[3].mxu0 }
 0x2c3   :  { %311 = vst.msk [vmem:[#allocation7] sm:$0x1] %vm310_vm2, %v307_v54 }
 0x2c4   :  { %520 = shalt.err (!%p517_p6)
}
 0x2c5   :  { %s521_s11 = scalar_lea.hbm %s601_s2, 16 }
 0x2c6   :  { %p522_p7 = scmp.ne.s32.totalorder %s601_s2, %s521_s11  ;;  %p525_p8 = scmp.lt.u32.totalorder %s521_s11, %s601_s2 }
 0x2c8   :  { %p527_p9 = pnand %p525_p8, %p522_p7 }
 0x2ca   :  { %530 = shalt.err (!%p527_p9)
}
 0x2cb   :  { %321 = dma.vmem_to_hbm [thread:$0]  %s319_s6, 16, %s601_s2, [#allocation4]  }
 0x2cc   :  { %535 = dma.done.wait [#allocation4], 16  }
 0x2cd   :  { %536 = vsyncadd [#allocation4], 4294967280 }
 0x2ce   :  { %325 = vsyncpa [#allocation3], 1 }
 0x2cf   :  { %326 = vsyncpa [#allocation6], 1 }
 0x2d0   :  { %327 = vsyncpa [#allocation4], 1 }

</bundles_post_ra>
